<compile_context>
chip_gen: v5e
topology: v5e:2x2
jax: 0.10.0
libtpu: 0.0.40
codegen_flags: <defaults>
</compile_context>

<pallas_src>
import functools

import jax
import jax.numpy as jnp
from jax.experimental import pallas as pl
from jax.experimental.pallas import tpu as pltpu

NUM_CAPSULES = 8
KSIZE = 5
PAD = 2
NEG_SLOPE = 0.2


def _leaky_relu(x):
    return jnp.where(x >= 0, x, NEG_SLOPE * x)


def _round_up(x, m):
    return ((x + m - 1) // m) * m


def _has_two_tensorcores():
    # v7x has 2 TensorCores per chip (v4/v5p expose a fused megacore); keep
    # >= 2 grid steps there so the "parallel" batch axis can feed both cores.
    try:
        kind = jax.devices()[0].device_kind.lower()
    except Exception:
        return False
    return any(t in kind for t in ("v7", "v4", "v5p"))


def _pick_batch_block(N, L, H, H4p, sub, stride, x_bytes, m_bytes, two_tc):
    budget = 40 << 20                       # leave headroom under v7x's 64 MiB
    max_nb = max(1, min(N, 64))
    if two_tc and N >= 2:
        max_nb = min(max_nb, N // 2)        # keep >= 2 grid steps for 2 TCs
    best = 1
    for nb in range(1, max_nb + 1):
        if N % nb:
            continue
        est = ((nb * stride + sub) * (H + H4p) * m_bytes          # slabs
               + 4 * nb * L * H * x_bytes                         # in/out blocks (2x buf)
               + 2 * KSIZE * (H * H4p + H4p * H) * m_bytes)       # weights (2x buf)
        if est <= budget:
            best = nb
    return best


def capsule_block_kernel(x_ref, w1_ref, b1_ref, w2_ref, b2_ref, out_ref,
                         xpad_ref, hpad_ref, *, nb, sub, stride):
    # Layout: activations are (nb, L, C) per block -- channels on lanes,
    # sequence position on sublanes.  All nb sequences are stacked along the
    # row axis of a zero-haloed slab; sequence n's data occupies rows
    # [n*stride + sub, n*stride + sub + L), i.e. data rows start on a
    # sublane-tile boundary and the per-sequence stride is a sublane multiple.
    _, L, H = x_ref.shape
    H4p = hpad_ref.shape[1]
    rc = nb * stride - sub       # conv output rows computed per grid step
    base = sub - PAD             # shifted-read base: window for row j starts here
    mdt = xpad_ref.dtype

    zx = jnp.zeros((PAD, H), mdt)
    zh = jnp.zeros((PAD, H4p), mdt)

    # Scatter the nb sequences at aligned offsets; zero ONLY the 2*PAD halo
    # rows around each sequence (data rows are fully overwritten, all other
    # slab rows are never read back).
    for n in range(nb):
        d0 = n * stride + sub
        xpad_ref[d0 - PAD:d0, :] = zx
        xpad_ref[d0:d0 + L, :] = x_ref[n].astype(mdt)
        xpad_ref[d0 + L:d0 + L + PAD, :] = zx

    # Conv1d(H -> H4p, k=5): 5 shifted (rc, H) @ (H, H4p) MXU matmuls with an
    # f32 accumulator (contraction depth = H).  Rows whose window straddles a
    # sequence boundary are garbage but land exactly on hidden-slab halo rows
    # that are re-zeroed below.
    h = jnp.dot(xpad_ref[base:base + rc, :], w1_ref[0],
                preferred_element_type=jnp.float32)
    for k in range(1, KSIZE):
        h = h + jnp.dot(xpad_ref[base + k:base + k + rc, :], w1_ref[k],
                        preferred_element_type=jnp.float32)
    h = _leaky_relu(h + b1_ref[...])                 # (rc, H4p), f32 VPU math

    # One bulk, sublane-aligned store of the hidden activations, then re-zero
    # the 2*PAD boundary rows of every sequence slot.
    hpad_ref[sub:sub + rc, :] = h.astype(mdt)
    for n in range(nb):
        d0 = n * stride + sub
        hpad_ref[d0 - PAD:d0, :] = zh
        hpad_ref[d0 + L:d0 + L + PAD, :] = zh

    # 8 capsule Conv1d(H4 -> H), summed (weights folded in the wrapper).  The
    # 5 taps are folded into the contraction dim: lane-concat the 5 shifted
    # views (each a whole number of 128-lane tiles since H4p % 128 == 0) and
    # run ONE deep (rc, 5*H4p) @ (5*H4p, H) matmul.
    h_i2c = jnp.concatenate(
        [hpad_ref[base + k:base + k + rc, :] for k in range(KSIZE)], axis=-1)
    o = jnp.dot(h_i2c, w2_ref[...], preferred_element_type=jnp.float32)
    o = _leaky_relu(o + b2_ref[...])                 # (rc, H), f32 VPU math

    # Residual: out = x + 0.1 * res.  Rows for sequence n start at the
    # sublane-aligned offset n*stride.
    for n in range(nb):
        out_ref[n] = (x_ref[n].astype(jnp.float32)
                      + 0.1 * o[n * stride:n * stride + L, :]
                      ).astype(out_ref.dtype)


@functools.partial(jax.jit, static_argnames=("batch_block", "matmul_dtype"))
def capsule_block(x_ncl, w1, b1, w2, b2, *, batch_block=None,
                  matmul_dtype=jnp.bfloat16):
    """CapsuleBlock forward.

    x_ncl: (N, H, L) like PyTorch NCL.  Weights in PyTorch Conv1d layout:
    w1: (H/4, H, K), b1: (H/4,), w2: (8, H, H/4, K), b2: (8, H).
    matmul_dtype: MXU operand dtype (bf16 default; f32 = bit-exact test mode).
    Accumulation and all element-wise math stay f32.
    """
    N, H, L = x_ncl.shape
    H4 = w1.shape[0]
    H4p = _round_up(H4, 128)                       # lane-dense hidden channels
    mdt = jnp.dtype(matmul_dtype)
    sub = 8 if mdt == jnp.dtype(jnp.float32) else 16   # sublane tile of the slab
    stride = sub + _round_up(L, sub)               # per-sequence slab stride

    two_tc = _has_two_tensorcores()
    if batch_block is not None:
        nb = max(1, min(int(batch_block), N))
        while N % nb:
            nb -= 1
    else:
        nb = _pick_batch_block(N, L, H, H4p, sub, stride,
                               jnp.dtype(x_ncl.dtype).itemsize, mdt.itemsize,
                               two_tc)
    rslab = nb * stride + sub

    # One-off weight prep:
    #  * fold the 8 capsules: sum_c(conv_c(h) + b_c) == conv_{sum w}(h) + sum b
    #  * contraction (input-channel) dim adjacent to the matmul, taps of the
    #    second conv flattened into its contraction (im2col weight layout)
    #  * zero-pad hidden channels to H4p (padded columns/rows contribute 0).
    w1_t = jnp.transpose(w1, (2, 1, 0))                               # (K, H, H4)
    w1_p = jnp.pad(w1_t, ((0, 0), (0, 0), (0, H4p - H4))).astype(matmul_dtype)
    b1_p = jnp.pad(b1, (0, H4p - H4)).reshape(1, H4p).astype(jnp.float32)

    w2_sum = jnp.sum(w2, axis=0)                                      # (H, H4, K)
    w2_t = jnp.transpose(w2_sum, (2, 1, 0))                           # (K, H4, H)
    w2_p = jnp.pad(w2_t, ((0, 0), (0, H4p - H4), (0, 0)))             # (K, H4p, H)
    w2_i2c = w2_p.reshape(KSIZE * H4p, H).astype(matmul_dtype)        # (K*H4p, H)
    b2_s = jnp.sum(b2, axis=0).reshape(1, H).astype(jnp.float32)

    # Rough VMEM budget for this configuration; raise the scoped limit past
    # the small defaults (v5e: 16 MiB) but stay safely under v7x's 64 MiB.
    vmem_est = (rslab * (H + H4p) * mdt.itemsize
                + 4 * nb * L * H * jnp.dtype(x_ncl.dtype).itemsize
                + 2 * KSIZE * (H * H4p + H4p * H) * mdt.itemsize
                + 4 * (H4p + H) * 4)
    vmem_limit = int(min(max(2 * vmem_est + (4 << 20), 32 << 20), 48 << 20))

    # NCL -> NLC so length is on sublanes and channels on lanes.
    # TODO(synk): these transposes are NCL-interface adapters; if the
    # surrounding model kept activations in (N, L, C) they would disappear.
    x_nlc = jnp.transpose(x_ncl, (0, 2, 1))                           # (N, L, H)

    out_nlc = pl.pallas_call(
        functools.partial(capsule_block_kernel, nb=nb, sub=sub, stride=stride),
        out_shape=jax.ShapeDtypeStruct((N, L, H), x_ncl.dtype),
        grid=(N // nb,),
        in_specs=[
            pl.BlockSpec((nb, L, H), lambda i: (i, 0, 0)),
            pl.BlockSpec((KSIZE, H, H4p), lambda i: (0, 0, 0)),
            pl.BlockSpec((1, H4p), lambda i: (0, 0)),
            pl.BlockSpec((KSIZE * H4p, H), lambda i: (0, 0)),
            pl.BlockSpec((1, H), lambda i: (0, 0)),
        ],
        out_specs=pl.BlockSpec((nb, L, H), lambda i: (i, 0, 0)),
        scratch_shapes=[
            pltpu.VMEM((rslab, H), matmul_dtype),      # padded input slab
            pltpu.VMEM((rslab, H4p), matmul_dtype),    # padded hidden slab
        ],
        compiler_params=pltpu.CompilerParams(
            dimension_semantics=("parallel",),
            vmem_limit_bytes=vmem_limit),
    )(x_nlc, w1_p, b1_p, w2_i2c, b2_s)

    return jnp.transpose(out_nlc, (0, 2, 1))                          # back to NCL


def reference(x, w1, b1, w2, b2):
    """Pure-JAX reference with lax.conv (NCL layout, PyTorch weight layout)."""
    dn = ("NCH", "OIH", "NCH")
    h = jax.lax.conv_general_dilated(x, w1, (1,), [(PAD, PAD)],
                                     dimension_numbers=dn) + b1[None, :, None]
    h = _leaky_relu(h)
    out = jnp.zeros_like(x)
    for cap in range(NUM_CAPSULES):
        out = out + jax.lax.conv_general_dilated(h, w2[cap], (1,), [(PAD, PAD)],
                                                 dimension_numbers=dn)
        out = out + b2[cap][None, :, None]
    out = _leaky_relu(out)
    return x + 0.1 * out


if __name__ == "__main__":
    N, H, L = 2, 32, 16       # batch=2, hidden=32, seq=16
    H4 = H // 4

    key = jax.random.PRNGKey(0)
    kx, k1, kb1, k2, kb2 = jax.random.split(key, 5)
    x = jax.random.normal(kx, (N, H, L), jnp.float32)
    w1 = jax.random.normal(k1, (H4, H, KSIZE), jnp.float32) * 0.1
    b1 = jax.random.normal(kb1, (H4,), jnp.float32) * 0.1
    w2 = jax.random.normal(k2, (NUM_CAPSULES, H, H4, KSIZE), jnp.float32) * 0.1
    b2 = jax.random.normal(kb2, (NUM_CAPSULES, H), jnp.float32) * 0.1

    ref = jax.block_until_ready(reference(x, w1, b1, w2, b2))

    # f32-MXU test mode: matches the f32 reference tightly.
    out_f32 = jax.block_until_ready(
        capsule_block(x, w1, b1, w2, b2, matmul_dtype=jnp.float32))
    assert out_f32.shape == x.shape
    err_f32 = float(jnp.max(jnp.abs(out_f32 - ref)))
    assert err_f32 < 1e-4, err_f32

    # Default path: bf16 MXU operands, f32 accumulation -- loose tolerance.
    out = jax.block_until_ready(capsule_block(x, w1, b1, w2, b2))
    assert out.shape == x.shape
    err = float(jnp.max(jnp.abs(out - ref)))
    assert err < 5e-2, err

    print("KERNEL_OK")
</pallas_src>

<mosaic_0001>
module attributes {stable_mosaic.version = 11 : i64} {
  func.func @capsule_block_kernel(%arg0: i32, %arg1: memref<2x16x32xf32, #tpu.memory_space<vmem>>, %arg2: memref<5x32x128xf32, #tpu.memory_space<vmem>>, %arg3: memref<1x128xf32, #tpu.memory_space<vmem>>, %arg4: memref<640x32xf32, #tpu.memory_space<vmem>>, %arg5: memref<1x32xf32, #tpu.memory_space<vmem>>, %arg6: memref<2x16x32xf32, #tpu.memory_space<vmem>>, %arg7: memref<56x32xf32, #tpu.memory_space<vmem>>, %arg8: memref<56x128xf32, #tpu.memory_space<vmem>>) attributes {dimension_semantics = [#tpu.dimension_semantics<parallel>], iteration_bounds = array<i64: 1>, scalar_prefetch = 0 : i64, scratch_operands = 2 : i64, tpu.core_type = #tpu.core_type<tc>, window_params = [{transform_indices = @transform_0, window_bounds = array<i64: 2, 16, 32>}, {pipeline_mode = #tpu.pipeline_mode<synchronous>, transform_indices = @transform_1, window_bounds = array<i64: 5, 32, 128>}, {pipeline_mode = #tpu.pipeline_mode<synchronous>, transform_indices = @transform_2, window_bounds = array<i64: 1, 128>}, {pipeline_mode = #tpu.pipeline_mode<synchronous>, transform_indices = @transform_3, window_bounds = array<i64: 640, 32>}, {pipeline_mode = #tpu.pipeline_mode<synchronous>, transform_indices = @transform_4, window_bounds = array<i64: 1, 32>}, {transform_indices = @transform_5, window_bounds = array<i64: 2, 16, 32>}]} {
    %cst = arith.constant 0.000000e+00 : f32
    %0 = vector.broadcast %cst : f32 to vector<2x32xf32>
    %cst_0 = arith.constant 0.000000e+00 : f32
    %1 = vector.broadcast %cst_0 : f32 to vector<2x128xf32>
    %c6 = arith.constant 6 : index
    %c0 = arith.constant 0 : index
    %2 = vector.load %arg7[%c6, %c0] : memref<56x32xf32, #tpu.memory_space<vmem>>, vector<2x32xf32>
    tpu.vector_store %arg7[%c6, %c0], %0 {strides = array<i32>} : memref<56x32xf32, #tpu.memory_space<vmem>>, vector<2x32xf32>,
    %c0_1 = arith.constant 0 : index
    %c0_2 = arith.constant 0 : index
    %c0_3 = arith.constant 0 : index
    %3 = vector.load %arg1[%c0_1, %c0_2, %c0_3] : memref<2x16x32xf32, #tpu.memory_space<vmem>>, vector<1x16x32xf32>
    %4 = vector.shape_cast %3 : vector<1x16x32xf32> to vector<16x32xf32>
    %c8 = arith.constant 8 : index
    %c0_4 = arith.constant 0 : index
    %5 = vector.load %arg7[%c8, %c0_4] : memref<56x32xf32, #tpu.memory_space<vmem>>, vector<16x32xf32>
    tpu.vector_store %arg7[%c8, %c0_4], %4 {strides = array<i32>} : memref<56x32xf32, #tpu.memory_space<vmem>>, vector<16x32xf32>,
    %c24 = arith.constant 24 : index
    %c0_5 = arith.constant 0 : index
    %6 = vector.load %arg7[%c24, %c0_5] : memref<56x32xf32, #tpu.memory_space<vmem>>, vector<2x32xf32>
    tpu.vector_store %arg7[%c24, %c0_5], %0 {strides = array<i32>} : memref<56x32xf32, #tpu.memory_space<vmem>>, vector<2x32xf32>,
    %c30 = arith.constant 30 : index
    %c0_6 = arith.constant 0 : index
    %7 = vector.load %arg7[%c30, %c0_6] : memref<56x32xf32, #tpu.memory_space<vmem>>, vector<2x32xf32>
    tpu.vector_store %arg7[%c30, %c0_6], %0 {strides = array<i32>} : memref<56x32xf32, #tpu.memory_space<vmem>>, vector<2x32xf32>,
    %c1 = arith.constant 1 : index
    %c0_7 = arith.constant 0 : index
    %c0_8 = arith.constant 0 : index
    %8 = vector.load %arg1[%c1, %c0_7, %c0_8] : memref<2x16x32xf32, #tpu.memory_space<vmem>>, vector<1x16x32xf32>
    %9 = vector.shape_cast %8 : vector<1x16x32xf32> to vector<16x32xf32>
    %c32 = arith.constant 32 : index
    %c0_9 = arith.constant 0 : index
    %10 = vector.load %arg7[%c32, %c0_9] : memref<56x32xf32, #tpu.memory_space<vmem>>, vector<16x32xf32>
    tpu.vector_store %arg7[%c32, %c0_9], %9 {strides = array<i32>} : memref<56x32xf32, #tpu.memory_space<vmem>>, vector<16x32xf32>,
    %c48 = arith.constant 48 : index
    %c0_10 = arith.constant 0 : index
    %11 = vector.load %arg7[%c48, %c0_10] : memref<56x32xf32, #tpu.memory_space<vmem>>, vector<2x32xf32>
    tpu.vector_store %arg7[%c48, %c0_10], %0 {strides = array<i32>} : memref<56x32xf32, #tpu.memory_space<vmem>>, vector<2x32xf32>,
    %c6_11 = arith.constant 6 : index
    %c0_12 = arith.constant 0 : index
    %12 = vector.load %arg7[%c6_11, %c0_12] : memref<56x32xf32, #tpu.memory_space<vmem>>, vector<40x32xf32>
    %c0_13 = arith.constant 0 : index
    %c0_14 = arith.constant 0 : index
    %c0_15 = arith.constant 0 : index
    %13 = vector.load %arg2[%c0_13, %c0_14, %c0_15] : memref<5x32x128xf32, #tpu.memory_space<vmem>>, vector<1x32x128xf32>
    %14 = vector.shape_cast %13 : vector<1x32x128xf32> to vector<32x128xf32>
    %cst_16 = arith.constant dense<0.000000e+00> : vector<40x128xf32>
    %15 = tpu.matmul %12, %14, %cst_16 {dimension_numbers = #tpu.dot_dimension_numbers<[1], [0], [0], [1], [0, 0, 1, 1], [], []>} : vector<40x32xf32>, vector<32x128xf32>, vector<40x128xf32> -> vector<40x128xf32>
    %c7 = arith.constant 7 : index
    %c0_17 = arith.constant 0 : index
    %16 = vector.load %arg7[%c7, %c0_17] : memref<56x32xf32, #tpu.memory_space<vmem>>, vector<40x32xf32>
    %c1_18 = arith.constant 1 : index
    %c0_19 = arith.constant 0 : index
    %c0_20 = arith.constant 0 : index
    %17 = vector.load %arg2[%c1_18, %c0_19, %c0_20] : memref<5x32x128xf32, #tpu.memory_space<vmem>>, vector<1x32x128xf32>
    %18 = vector.shape_cast %17 : vector<1x32x128xf32> to vector<32x128xf32>
    %cst_21 = arith.constant dense<0.000000e+00> : vector<40x128xf32>
    %19 = tpu.matmul %16, %18, %cst_21 {dimension_numbers = #tpu.dot_dimension_numbers<[1], [0], [0], [1], [0, 0, 1, 1], [], []>} : vector<40x32xf32>, vector<32x128xf32>, vector<40x128xf32> -> vector<40x128xf32>
    %20 = arith.addf %15, %19 : vector<40x128xf32>
    %c8_22 = arith.constant 8 : index
    %c0_23 = arith.constant 0 : index
    %21 = vector.load %arg7[%c8_22, %c0_23] : memref<56x32xf32, #tpu.memory_space<vmem>>, vector<40x32xf32>
    %c2 = arith.constant 2 : index
    %c0_24 = arith.constant 0 : index
    %c0_25 = arith.constant 0 : index
    %22 = vector.load %arg2[%c2, %c0_24, %c0_25] : memref<5x32x128xf32, #tpu.memory_space<vmem>>, vector<1x32x128xf32>
    %23 = vector.shape_cast %22 : vector<1x32x128xf32> to vector<32x128xf32>
    %cst_26 = arith.constant dense<0.000000e+00> : vector<40x128xf32>
    %24 = tpu.matmul %21, %23, %cst_26 {dimension_numbers = #tpu.dot_dimension_numbers<[1], [0], [0], [1], [0, 0, 1, 1], [], []>} : vector<40x32xf32>, vector<32x128xf32>, vector<40x128xf32> -> vector<40x128xf32>
    %25 = arith.addf %20, %24 : vector<40x128xf32>
    %c9 = arith.constant 9 : index
    %c0_27 = arith.constant 0 : index
    %26 = vector.load %arg7[%c9, %c0_27] : memref<56x32xf32, #tpu.memory_space<vmem>>, vector<40x32xf32>
    %c3 = arith.constant 3 : index
    %c0_28 = arith.constant 0 : index
    %c0_29 = arith.constant 0 : index
    %27 = vector.load %arg2[%c3, %c0_28, %c0_29] : memref<5x32x128xf32, #tpu.memory_space<vmem>>, vector<1x32x128xf32>
    %28 = vector.shape_cast %27 : vector<1x32x128xf32> to vector<32x128xf32>
    %cst_30 = arith.constant dense<0.000000e+00> : vector<40x128xf32>
    %29 = tpu.matmul %26, %28, %cst_30 {dimension_numbers = #tpu.dot_dimension_numbers<[1], [0], [0], [1], [0, 0, 1, 1], [], []>} : vector<40x32xf32>, vector<32x128xf32>, vector<40x128xf32> -> vector<40x128xf32>
    %30 = arith.addf %25, %29 : vector<40x128xf32>
    %c10 = arith.constant 10 : index
    %c0_31 = arith.constant 0 : index
    %31 = vector.load %arg7[%c10, %c0_31] : memref<56x32xf32, #tpu.memory_space<vmem>>, vector<40x32xf32>
    %c4 = arith.constant 4 : index
    %c0_32 = arith.constant 0 : index
    %c0_33 = arith.constant 0 : index
    %32 = vector.load %arg2[%c4, %c0_32, %c0_33] : memref<5x32x128xf32, #tpu.memory_space<vmem>>, vector<1x32x128xf32>
    %33 = vector.shape_cast %32 : vector<1x32x128xf32> to vector<32x128xf32>
    %cst_34 = arith.constant dense<0.000000e+00> : vector<40x128xf32>
    %34 = tpu.matmul %31, %33, %cst_34 {dimension_numbers = #tpu.dot_dimension_numbers<[1], [0], [0], [1], [0, 0, 1, 1], [], []>} : vector<40x32xf32>, vector<32x128xf32>, vector<40x128xf32> -> vector<40x128xf32>
    %35 = arith.addf %30, %34 : vector<40x128xf32>
    %c0_35 = arith.constant 0 : index
    %c0_36 = arith.constant 0 : index
    %36 = vector.load %arg3[%c0_35, %c0_36] : memref<1x128xf32, #tpu.memory_space<vmem>>, vector<1x128xf32>
    %37 = vector.broadcast %36 : vector<1x128xf32> to vector<40x128xf32>
    %38 = arith.addf %35, %37 : vector<40x128xf32>
    %cst_37 = arith.constant 0.000000e+00 : f32
    %39 = vector.broadcast %cst_37 : f32 to vector<40x128xf32>
    %40 = arith.cmpf oge, %38, %39 : vector<40x128xf32>
    %cst_38 = arith.constant 2.000000e-01 : f32
    %41 = vector.broadcast %cst_38 : f32 to vector<40x128xf32>
    %42 = arith.mulf %41, %38 : vector<40x128xf32>
    %43 = arith.select %40, %38, %42 : vector<40x128xi1>, vector<40x128xf32>
    %c8_39 = arith.constant 8 : index
    %c0_40 = arith.constant 0 : index
    %44 = vector.load %arg8[%c8_39, %c0_40] : memref<56x128xf32, #tpu.memory_space<vmem>>, vector<40x128xf32>
    tpu.vector_store %arg8[%c8_39, %c0_40], %43 {strides = array<i32>} : memref<56x128xf32, #tpu.memory_space<vmem>>, vector<40x128xf32>,
    %c6_41 = arith.constant 6 : index
    %c0_42 = arith.constant 0 : index
    %45 = vector.load %arg8[%c6_41, %c0_42] : memref<56x128xf32, #tpu.memory_space<vmem>>, vector<2x128xf32>
    tpu.vector_store %arg8[%c6_41, %c0_42], %1 {strides = array<i32>} : memref<56x128xf32, #tpu.memory_space<vmem>>, vector<2x128xf32>,
    %c24_43 = arith.constant 24 : index
    %c0_44 = arith.constant 0 : index
    %46 = vector.load %arg8[%c24_43, %c0_44] : memref<56x128xf32, #tpu.memory_space<vmem>>, vector<2x128xf32>
    tpu.vector_store %arg8[%c24_43, %c0_44], %1 {strides = array<i32>} : memref<56x128xf32, #tpu.memory_space<vmem>>, vector<2x128xf32>,
    %c30_45 = arith.constant 30 : index
    %c0_46 = arith.constant 0 : index
    %47 = vector.load %arg8[%c30_45, %c0_46] : memref<56x128xf32, #tpu.memory_space<vmem>>, vector<2x128xf32>
    tpu.vector_store %arg8[%c30_45, %c0_46], %1 {strides = array<i32>} : memref<56x128xf32, #tpu.memory_space<vmem>>, vector<2x128xf32>,
    %c48_47 = arith.constant 48 : index
    %c0_48 = arith.constant 0 : index
    %48 = vector.load %arg8[%c48_47, %c0_48] : memref<56x128xf32, #tpu.memory_space<vmem>>, vector<2x128xf32>
    tpu.vector_store %arg8[%c48_47, %c0_48], %1 {strides = array<i32>} : memref<56x128xf32, #tpu.memory_space<vmem>>, vector<2x128xf32>,
    %c6_49 = arith.constant 6 : index
    %c0_50 = arith.constant 0 : index
    %49 = vector.load %arg8[%c6_49, %c0_50] : memref<56x128xf32, #tpu.memory_space<vmem>>, vector<40x128xf32>
    %c7_51 = arith.constant 7 : index
    %c0_52 = arith.constant 0 : index
    %50 = vector.load %arg8[%c7_51, %c0_52] : memref<56x128xf32, #tpu.memory_space<vmem>>, vector<40x128xf32>
    %c8_53 = arith.constant 8 : index
    %c0_54 = arith.constant 0 : index
    %51 = vector.load %arg8[%c8_53, %c0_54] : memref<56x128xf32, #tpu.memory_space<vmem>>, vector<40x128xf32>
    %c9_55 = arith.constant 9 : index
    %c0_56 = arith.constant 0 : index
    %52 = vector.load %arg8[%c9_55, %c0_56] : memref<56x128xf32, #tpu.memory_space<vmem>>, vector<40x128xf32>
    %c10_57 = arith.constant 10 : index
    %c0_58 = arith.constant 0 : index
    %53 = vector.load %arg8[%c10_57, %c0_58] : memref<56x128xf32, #tpu.memory_space<vmem>>, vector<40x128xf32>
    %54 = tpu.concatenate %49, %50, %51, %52, %53 in 1 : vector<40x128xf32>, vector<40x128xf32>, vector<40x128xf32>, vector<40x128xf32>, vector<40x128xf32> -> vector<40x640xf32>
    %c0_59 = arith.constant 0 : index
    %c0_60 = arith.constant 0 : index
    %55 = vector.load %arg4[%c0_59, %c0_60] : memref<640x32xf32, #tpu.memory_space<vmem>>, vector<640x32xf32>
    %cst_61 = arith.constant dense<0.000000e+00> : vector<40x32xf32>
    %56 = tpu.matmul %54, %55, %cst_61 {dimension_numbers = #tpu.dot_dimension_numbers<[1], [0], [0], [1], [0, 0, 1, 1], [], []>} : vector<40x640xf32>, vector<640x32xf32>, vector<40x32xf32> -> vector<40x32xf32>
    %c0_62 = arith.constant 0 : index
    %c0_63 = arith.constant 0 : index
    %57 = vector.load %arg5[%c0_62, %c0_63] : memref<1x32xf32, #tpu.memory_space<vmem>>, vector<1x32xf32>
    %58 = vector.broadcast %57 : vector<1x32xf32> to vector<40x32xf32>
    %59 = arith.addf %56, %58 : vector<40x32xf32>
    %cst_64 = arith.constant 0.000000e+00 : f32
    %60 = vector.broadcast %cst_64 : f32 to vector<40x32xf32>
    %61 = arith.cmpf oge, %59, %60 : vector<40x32xf32>
    %cst_65 = arith.constant 2.000000e-01 : f32
    %62 = vector.broadcast %cst_65 : f32 to vector<40x32xf32>
    %63 = arith.mulf %62, %59 : vector<40x32xf32>
    %64 = arith.select %61, %59, %63 : vector<40x32xi1>, vector<40x32xf32>
    %c0_66 = arith.constant 0 : index
    %c0_67 = arith.constant 0 : index
    %c0_68 = arith.constant 0 : index
    %65 = vector.load %arg1[%c0_66, %c0_67, %c0_68] : memref<2x16x32xf32, #tpu.memory_space<vmem>>, vector<1x16x32xf32>
    %66 = vector.shape_cast %65 : vector<1x16x32xf32> to vector<16x32xf32>
    %67 = vector.extract_strided_slice %64 {offsets = [0, 0], sizes = [16, 32], strides = [1, 1]} : vector<40x32xf32> to vector<16x32xf32>
    %cst_69 = arith.constant 1.000000e-01 : f32
    %68 = vector.broadcast %cst_69 : f32 to vector<16x32xf32>
    %69 = arith.mulf %68, %67 : vector<16x32xf32>
    %70 = arith.addf %66, %69 : vector<16x32xf32>
    %c0_70 = arith.constant 0 : index
    %c0_71 = arith.constant 0 : index
    %c0_72 = arith.constant 0 : index
    %71 = vector.load %arg6[%c0_70, %c0_71, %c0_72] : memref<2x16x32xf32, #tpu.memory_space<vmem>>, vector<1x16x32xf32>
    %72 = vector.shape_cast %71 : vector<1x16x32xf32> to vector<16x32xf32>
    %73 = vector.shape_cast %70 : vector<16x32xf32> to vector<1x16x32xf32>
    tpu.vector_store %arg6[%c0_70, %c0_71, %c0_72], %73 {strides = array<i32>} : memref<2x16x32xf32, #tpu.memory_space<vmem>>, vector<1x16x32xf32>,
    %c1_73 = arith.constant 1 : index
    %c0_74 = arith.constant 0 : index
    %c0_75 = arith.constant 0 : index
    %74 = vector.load %arg1[%c1_73, %c0_74, %c0_75] : memref<2x16x32xf32, #tpu.memory_space<vmem>>, vector<1x16x32xf32>
    %75 = vector.shape_cast %74 : vector<1x16x32xf32> to vector<16x32xf32>
    %76 = vector.extract_strided_slice %64 {offsets = [24, 0], sizes = [16, 32], strides = [1, 1]} : vector<40x32xf32> to vector<16x32xf32>
    %cst_76 = arith.constant 1.000000e-01 : f32
    %77 = vector.broadcast %cst_76 : f32 to vector<16x32xf32>
    %78 = arith.mulf %77, %76 : vector<16x32xf32>
    %79 = arith.addf %75, %78 : vector<16x32xf32>
    %c1_77 = arith.constant 1 : index
    %c0_78 = arith.constant 0 : index
    %c0_79 = arith.constant 0 : index
    %80 = vector.load %arg6[%c1_77, %c0_78, %c0_79] : memref<2x16x32xf32, #tpu.memory_space<vmem>>, vector<1x16x32xf32>
    %81 = vector.shape_cast %80 : vector<1x16x32xf32> to vector<16x32xf32>
    %82 = vector.shape_cast %79 : vector<16x32xf32> to vector<1x16x32xf32>
    tpu.vector_store %arg6[%c1_77, %c0_78, %c0_79], %82 {strides = array<i32>} : memref<2x16x32xf32, #tpu.memory_space<vmem>>, vector<1x16x32xf32>,
    return
  }
  func.func @transform_0(%arg0: i32) -> (i32, i32, i32) {
    %c0_i32 = arith.constant 0 : i32
    %c0_i32_0 = arith.constant 0 : i32
    %c0_i32_1 = arith.constant 0 : i32
    return %arg0, %c0_i32, %c0_i32_0 : i32, i32, i32
  }
  func.func @transform_1(%arg0: i32) -> (i32, i32, i32) {
    %c0_i32 = arith.constant 0 : i32
    %c0_i32_0 = arith.constant 0 : i32
    %c0_i32_1 = arith.constant 0 : i32
    %c0_i32_2 = arith.constant 0 : i32
    return %c0_i32, %c0_i32_0, %c0_i32_1 : i32, i32, i32
  }
  func.func @transform_2(%arg0: i32) -> (i32, i32) {
    %c0_i32 = arith.constant 0 : i32
    %c0_i32_0 = arith.constant 0 : i32
    %c0_i32_1 = arith.constant 0 : i32
    return %c0_i32, %c0_i32_0 : i32, i32
  }
  func.func @transform_3(%arg0: i32) -> (i32, i32) {
    %c0_i32 = arith.constant 0 : i32
    %c0_i32_0 = arith.constant 0 : i32
    %c0_i32_1 = arith.constant 0 : i32
    return %c0_i32, %c0_i32_0 : i32, i32
  }
  func.func @transform_4(%arg0: i32) -> (i32, i32) {
    %c0_i32 = arith.constant 0 : i32
    %c0_i32_0 = arith.constant 0 : i32
    %c0_i32_1 = arith.constant 0 : i32
    return %c0_i32, %c0_i32_0 : i32, i32
  }
  func.func @transform_5(%arg0: i32) -> (i32, i32, i32) {
    %c0_i32 = arith.constant 0 : i32
    %c0_i32_0 = arith.constant 0 : i32
    %c0_i32_1 = arith.constant 0 : i32
    return %arg0, %c0_i32, %c0_i32_0 : i32, i32, i32
  }
}

</mosaic_0001>

<bundles_post_ra>
// kernel: capsule_block.1
= control target key start
LH: loop header
LB: loop body
LE: loop exit
PB: predicated region body
PF: predicated region fallthrough
CT: control target
= control target key end

     0   :  { %vm21_vm0 = vcmask 254976   ;;  %vm25_vm1 = vcmask 261120   ;;  %v776_v4 = vmov 0.0   ;;  %s1205_s0 = inlined_call_operand.vmem [shape: f32[2,16,32], index: 0, kind: input, shape index: {}]   ;;  %s1206_s1 = inlined_call_operand.vmem [shape: f32[5,32,128], index: 1, kind: input, shape index: {}]   ;;  %s1207_s2 = inlined_call_operand.vmem [shape: f32[1,128], index: 2, kind: input, shape index: {}]   ;;  %s1208_s3 = inlined_call_operand.vmem [shape: f32[640,32], index: 3, kind: input, shape index: {}]   ;;  %s1209_s4 = inlined_call_operand.vmem [shape: f32[1,32], index: 4, kind: input, shape index: {}]   ;;  %s1210_s5 = inlined_call_operand.hbm [shape: f32[2,16,32], index: 5, kind: output, shape index: {}]  }
   0x1   :  { %v684_v0 = vld [vmem:[%s1206_s1 + $0x38] sm:$0xff]  ;;  %v683_v2 = vld [vmem:[%s1206_s1 + $0x30] sm:$0xff]  ;;  %29 = vst.msk [vmem:[#allocation2 + $0x1e] sm:$0x3] %vm21_vm0, %v776_v4  ;;  %v682_v5 = vld [vmem:[%s1206_s1 + $0x28] sm:$0xff] }
   0x2   :  { %v44_v1 = vld [vmem:[%s1206_s1 + $0x18] sm:$0xff]  ;;  %724 = vmatpush.msra.mxu2 %v684_v0  ;;  %v43_v3 = vld [vmem:[%s1206_s1 + $0x10] sm:$0xff]  ;;  %82 = vmatpush.msra.mxu0 %v684_v0  ;;  %v42_v6 = vld [vmem:[%s1206_s1 + $0x8] sm:$0xff]  ;;  %22 = vst.msk [vmem:[#allocation2 + $0x6] sm:$0x3] %vm21_vm0, %v776_v4 }
   0x3   :  { %129 = vmatpush.msra.mxu1 %v44_v1  ;;  %v833_v7 = vld [vmem:[%s1205_s0 + $0x10] sm:$0xff]  ;;  %v681_v8 = vld [vmem:[%s1206_s1 + $0x20] sm:$0xff]  ;;  %28 = vst.msk [vmem:[#allocation2 + $0x18] sm:$0x3] %vm21_vm0, %v776_v4  ;;  %v698_v11 = vld [vmem:[%s1206_s1 + $0x58] sm:$0xff] }
   0x4   :  { %725 = vmatpush.msra.mxu2 %v683_v2  ;;  %33 = vst.msk [vmem:[#allocation2 + $0x20] sm:$0xff] %vm25_vm1, %v833_v7  ;;  %83 = vmatpush.msra.mxu0 %v683_v2  ;;  %v41_v9 = vld [vmem:[%s1206_s1] sm:$0xff]  ;;  %v707_v12 = vld [vmem:[%s1206_s1 + $0x78] sm:$0xff]  ;;  %v706_v15 = vld [vmem:[%s1206_s1 + $0x70] sm:$0xff] }
   0x5   :  { %130 = vmatpush.msra.mxu1 %v43_v3  ;;  %35 = vst.msk [vmem:[#allocation2 + $0x30] sm:$0x3] %vm21_vm0, %v776_v4  ;;  %v852_v10 = vld [vmem:[%s1205_s0] sm:$0xff]  ;;  %v716_v13 = vld [vmem:[%s1206_s1 + $0x98] sm:$0xff]  ;;  %248 = vmatpush.msra.mxu3 %v707_v12  ;;  %v697_v16 = vld [vmem:[%s1206_s1 + $0x50] sm:$0xff] }
   0x6   :  { %726 = vmatpush.msra.mxu2 %v682_v5  ;;  %84 = vmatpush.msra.mxu0 %v682_v5  ;;  %364 = vst [vmem:[#allocation3 + $0x6] sm:$0x3] %v776_v4  ;;  %v867_v14 = vld [vmem:[%s1205_s0 + $0x18] sm:$0xff]  ;;  %v879_v17 = vld [vmem:[%s1205_s0 + $0x8] sm:$0xff]  ;;  %v715_v18 = vld [vmem:[%s1206_s1 + $0x90] sm:$0xff] }
   0x7   :  { %131 = vmatpush.msra.mxu1 %v42_v6  ;;  %367 = vst [vmem:[#allocation3 + $0x30] sm:$0x3] %v776_v4  ;;  %v696_v19 = vld [vmem:[%s1206_s1 + $0x48] sm:$0xff]  ;;  %249 = vmatpush.msra.mxu3 %v706_v15 }
   0x8   :  { %727 = vmatpush.msra.mxu2 %v681_v8  ;;  %26 = vst.msk [vmem:[#allocation2 + $0x8] sm:$0xff] %vm25_vm1, %v852_v10  ;;  %85 = vmatpush.msra.mxu0 %v681_v8  ;;  %v705_v20 = vld [vmem:[%s1206_s1 + $0x68] sm:$0xff] }
   0x9   :  { %132 = vmatpush.msra.mxu1 %v41_v9  ;;  %34 = vst.msk [vmem:[#allocation2 + $0x28] sm:$0xff] %vm25_vm1, %v867_v14 }
   0xa   :  { %186 = vmatpush.msrb.mxu2 %v698_v11  ;;  %310 = vmatpush.msrb.mxu0 %v716_v13 }
   0xb   :  { %10 = vsyncpa [#allocation5], 0  ;;  %v48_v21 = vld [vmem:[#allocation2 + $0x1f] sm:$0xff]  ;;  %27 = vst.msk [vmem:[#allocation2 + $0x10] sm:$0xff] %vm25_vm1, %v879_v17  ;;  %v714_v22 = vld [vmem:[%s1206_s1 + $0x88] sm:$0xff]  ;;  %250 = vmatpush.msra.mxu3 %v705_v20  ;;  %s667_s17 = sshll.u32 %s1210_s5, 4  ;;  %s668_s17 = int_to_ptr.hbm [resolvable:$true] %s667_s17 }
   0xc   :  { %187 = vmatpush.msrb.mxu2 %v697_v16  ;;  %311 = vmatpush.msrb.mxu0 %v715_v18  ;;  %v695_v23 = vld [vmem:[%s1206_s1 + $0x40] sm:$0xff]  ;;  %v151_v40 = vld [vmem:[#allocation2 + $0x18] sm:$0xff]  ;;  %v439_v51 = vld [vmem:[%s1208_s3 + $0x170] sm:$0xff]  ;;  %s778_s18 = smov 128  }
   0xd   :  { %688 = vmatmul.msk.f32.vlgmr.msra.gmra.mxu2 %vm25_vm1, %v48_v21  ;;  %v704_v24 = vld [vmem:[%s1206_s1 + $0x60] sm:$0xff]  ;;  %v440_v50 = vld [vmem:[%s1208_s3 + $0x178] sm:$0xff]  ;;  %v438_v52 = vld [vmem:[%s1208_s3 + $0x168] sm:$0xff] }
   0xe   :  { %188 = vmatpush.msrb.mxu2 %v696_v19  ;;  %v713_v25 = vld [vmem:[%s1206_s1 + $0x80] sm:$0xff]  ;;  %312 = vmatpush.msrb.mxu0 %v714_v22  ;;  %v408_v53 = vld [vmem:[%s1208_s3 + $0x78] sm:$0xff]  ;;  %v407_v56 = vld [vmem:[%s1208_s3 + $0x70] sm:$0xff] }
   0xf   :  { %251 = vmatpush.msra.mxu3 %v704_v24  ;;  %v36_v26 = vld [vmem:[#allocation2 + $0x6] sm:$0xff]  ;;  %v213_v37 = vld [vmem:[#allocation2 + $0x19] sm:$0xff]  ;;  %477 = vmatpush.msrb.mxu1 %v408_v53  ;;  %v423_v57 = vld [vmem:[%s1208_s3 + $0xf0] sm:$0xff] }
  0x10   :  { %189 = vmatpush.msrb.mxu2 %v695_v23  ;;  %v45_v27 = vld [vmem:[#allocation2 + $0x7] sm:$0xff]  ;;  %313 = vmatpush.msrb.mxu0 %v713_v25  ;;  %v39_v38 = vld [vmem:[#allocation2 + $0x1e] sm:$0xff]  ;;  %v435_v61 = vld [vmem:[%s1208_s3 + $0x150] sm:$0xff] }
  0x11   :  { %690 = vmatmul.msk.f32.vlgmr.msra.gmra.mxu1 %vm25_vm1, %v36_v26  ;;  %685 = vmatmul.msk.f32.vlgmr.msra.gmra.mxu0 %vm25_vm1, %v45_v27  ;;  %v49_v28 = vld [vmem:[#allocation2 + $0x27] sm:$0xff]  ;;  %v275_v46 = vld [vmem:[#allocation2 + $0x1a] sm:$0xff]  ;;  %v403_v6 = vld [vmem:[%s1208_s3 + $0x50] sm:$0xff] }
  0x12   :  { %v211_v29 = vld [vmem:[#allocation2 + $0x9] sm:$0xff]  ;;  %v212_v33 = vld [vmem:[#allocation2 + $0x11] sm:$0xff]  ;;  %v214_v41 = vld [vmem:[#allocation2 + $0x21] sm:$0xff]  ;;  %539 = vmatpush.msrb.mxu3 %v440_v50  ;;  %478 = vmatpush.msrb.mxu1 %v407_v56 }
  0x13   :  { %708 = vmatmul.msk.f32.vlgmr.msra.gmra.mxu3 %vm25_vm1, %v211_v29  ;;  %v37_v30 = vld [vmem:[#allocation2 + $0xe] sm:$0xff]  ;;  %v38_v34 = vld [vmem:[#allocation2 + $0x16] sm:$0xff]  ;;  %v40_v42 = vld [vmem:[#allocation2 + $0x26] sm:$0xff] }
  0x14   :  { %v46_v31 = vld [vmem:[#allocation2 + $0xf] sm:$0xff]  ;;  %v47_v35 = vld [vmem:[#allocation2 + $0x17] sm:$0xff]  ;;  %v152_v44 = vld [vmem:[#allocation2 + $0x20] sm:$0xff]  ;;  %540 = vmatpush.msrb.mxu3 %v439_v51 }
  0x15   :  { %689 = vmatmul.msk.f32.gmra.mxu2 %vm25_vm1, %v49_v28  ;;  %v149_v32 = vld [vmem:[#allocation2 + $0x8] sm:$0xff]  ;;  %v150_v36 = vld [vmem:[#allocation2 + $0x10] sm:$0xff]  ;;  %v437_v54 = vld [vmem:[%s1208_s3 + $0x160] sm:$0xff] }
  0x16   :  { %v273_v39 = vld [vmem:[#allocation2 + $0xa] sm:$0xff]  ;;  %v274_v43 = vld [vmem:[#allocation2 + $0x12] sm:$0xff]  ;;  %v276_v48 = vld [vmem:[#allocation2 + $0x22] sm:$0xff]  ;;  %541 = vmatpush.msrb.mxu3 %v438_v52 }
  0x17   :  { %v215_v45 = vld [vmem:[#allocation2 + $0x29] sm:$0xff]  ;;  %v424_v55 = vld [vmem:[%s1208_s3 + $0xf8] sm:$0xff]  ;;  %v405_v63 = vld [vmem:[%s1208_s3 + $0x60] sm:$0xff] }
  0x18   :  { %v153_v47 = vld [vmem:[#allocation2 + $0x28] sm:$0xff]  ;;  %542 = vmatpush.msrb.mxu3 %v437_v54  ;;  %508 = vmatpush.msra.mxu2 %v424_v55  ;;  %v436_v58 = vld [vmem:[%s1208_s3 + $0x158] sm:$0xff]  ;;  %v421_v0 = vld [vmem:[%s1208_s3 + $0xe0] sm:$0xff] }
  0x19   :  { %691 = vmatmul.msk.f32.gmra.mxu1 %vm25_vm1, %v37_v30  ;;  %686 = vmatmul.msk.f32.gmra.mxu0 %vm25_vm1, %v46_v31  ;;  %v277_v49 = vld [vmem:[#allocation2 + $0x2a] sm:$0xff]  ;;  %v433_v1 = vld [vmem:[%s1208_s3 + $0x140] sm:$0xff]  ;;  %v404_v2 = vld [vmem:[%s1208_s3 + $0x58] sm:$0xff] }
  0x1a   :  { %v406_v59 = vld [vmem:[%s1208_s3 + $0x68] sm:$0xff]  ;;  %543 = vmatpush.msrb.mxu3 %v436_v58  ;;  %509 = vmatpush.msra.mxu2 %v423_v57  ;;  %v420_v3 = vld [vmem:[%s1208_s3 + $0xd8] sm:$0xff]  ;;  %v419_v8 = vld [vmem:[%s1208_s3 + $0xd0] sm:$0xff] }
  0x1b   :  { %709 = vmatmul.msk.f32.gmra.mxu3 %vm25_vm1, %v212_v33  ;;  %v422_v60 = vld [vmem:[%s1208_s3 + $0xe8] sm:$0xff]  ;;  %479 = vmatpush.msrb.mxu1 %v406_v59  ;;  %v456_v5 = vld [vmem:[%s1208_s3 + $0x1f8] sm:$0xff]  ;;  %v455_v9 = vld [vmem:[%s1208_s3 + $0x1f0] sm:$0xff] }
  0x1c   :  { %544 = vmatpush.msrb.mxu3 %v435_v61  ;;  %510 = vmatpush.msra.mxu2 %v422_v60  ;;  %v434_v62 = vld [vmem:[%s1208_s3 + $0x148] sm:$0xff]  ;;  %v432_v12 = vld [vmem:[%s1208_s3 + $0x138] sm:$0xff]  ;;  %v431_v16 = vld [vmem:[%s1208_s3 + $0x130] sm:$0xff] }
  0x1d   :  { %699 = vmatmul.msk.f32.vlgmr.msrb.gmra.mxu2 %vm25_vm1, %v149_v32  ;;  %480 = vmatpush.msrb.mxu1 %v405_v63  ;;  %v402_v11 = vld [vmem:[%s1208_s3 + $0x48] sm:$0xff]  ;;  %v401_v19 = vld [vmem:[%s1208_s3 + $0x40] sm:$0xff]  ;;  %v400_v23 = vld [vmem:[%s1208_s3 + $0x38] sm:$0xff] }
  0x1e   :  { %545 = vmatpush.msrb.mxu3 %v434_v62  ;;  %511 = vmatpush.msra.mxu2 %v421_v0  ;;  %v418_v13 = vld [vmem:[%s1208_s3 + $0xc8] sm:$0xff]  ;;  %v417_v20 = vld [vmem:[%s1208_s3 + $0xc0] sm:$0xff]  ;;  %v416_v24 = vld [vmem:[%s1208_s3 + $0xb8] sm:$0xff] }
  0x1f   :  { %570 = vmatpush.msra.mxu0 %v456_v5  ;;  %481 = vmatpush.msrb.mxu1 %v404_v2  ;;  %v454_v15 = vld [vmem:[%s1208_s3 + $0x1e8] sm:$0xff]  ;;  %v453_v21 = vld [vmem:[%s1208_s3 + $0x1e0] sm:$0xff]  ;;  %v452_v25 = vld [vmem:[%s1208_s3 + $0x1d8] sm:$0xff] }
  0x20   :  { %546 = vmatpush.msrb.mxu3 %v433_v1  ;;  %512 = vmatpush.msra.mxu2 %v420_v3  ;;  %v430_v18 = vld [vmem:[%s1208_s3 + $0x128] sm:$0xff]  ;;  %v429_v22 = vld [vmem:[%s1208_s3 + $0x120] sm:$0xff]  ;;  %v428_v26 = vld [vmem:[%s1208_s3 + $0x118] sm:$0xff] }
  0x21   :  { %692 = vmatmul.msk.f32.gmra.mxu1 %vm25_vm1, %v38_v34  ;;  %687 = vmatmul.msk.f32.gmra.mxu0 %vm25_vm1, %v47_v35  ;;  %v399_v27 = vld [vmem:[%s1208_s3 + $0x30] sm:$0xff]  ;;  %v398_v31 = vld [vmem:[%s1208_s3 + $0x28] sm:$0xff]  ;;  %v393_v52 = vld [vmem:[%s1208_s3] sm:$0xff] }
  0x22   :  { %571 = vmatpush.msra.mxu0 %v455_v9  ;;  %547 = vmatpush.msrb.mxu3 %v432_v12  ;;  %v415_v28 = vld [vmem:[%s1208_s3 + $0xb0] sm:$0xff]  ;;  %v414_v32 = vld [vmem:[%s1208_s3 + $0xa8] sm:$0xff]  ;;  %v409_v53 = vld [vmem:[%s1208_s3 + $0x80] sm:$0xff] }
  0x23   :  { %710 = vmatmul.msk.f32.gmra.mxu3 %vm25_vm1, %v213_v37  ;;  %482 = vmatpush.msrb.mxu1 %v403_v6  ;;  %v451_v29 = vld [vmem:[%s1208_s3 + $0x1d0] sm:$0xff]  ;;  %v450_v33 = vld [vmem:[%s1208_s3 + $0x1c8] sm:$0xff]  ;;  %v413_v37 = vld [vmem:[%s1208_s3 + $0xa0] sm:$0xff] }
  0x24   :  { %513 = vmatpush.msra.mxu2 %v419_v8  ;;  %572 = vmatpush.msra.mxu0 %v454_v15  ;;  %v427_v30 = vld [vmem:[%s1208_s3 + $0x110] sm:$0xff]  ;;  %v426_v34 = vld [vmem:[%s1208_s3 + $0x108] sm:$0xff]  ;;  %v445_v54 = vld [vmem:[%s1208_s3 + $0x1a0] sm:$0xff] }
  0x25   :  { %700 = vmatmul.msk.f32.gmra.mxu2 %vm25_vm1, %v150_v36  ;;  %548 = vmatpush.msrb.mxu3 %v431_v16  ;;  %v397_v36 = vld [vmem:[%s1208_s3 + $0x20] sm:$0xff]  ;;  %v446_v50 = vld [vmem:[%s1208_s3 + $0x1a8] sm:$0xff]  ;;  %v444_v57 = vld [vmem:[%s1208_s3 + $0x198] sm:$0xff] }
  0x26   :  { %483 = vmatpush.msrb.mxu1 %v402_v11  ;;  %514 = vmatpush.msra.mxu2 %v418_v13  ;;  %v443_v58 = vld [vmem:[%s1208_s3 + $0x190] sm:$0xff]  ;;  %v442_v59 = vld [vmem:[%s1208_s3 + $0x188] sm:$0xff]  ;;  %v441_v63 = vld [vmem:[%s1208_s3 + $0x180] sm:$0xff] }
  0x27   :  { %549 = vmatpush.msrb.mxu3 %v430_v18  ;;  %573 = vmatpush.msra.mxu0 %v453_v21  ;;  %v472_v2 = vld [vmem:[%s1208_s3 + $0x278] sm:$0xff]  ;;  %v471_v3 = vld [vmem:[%s1208_s3 + $0x270] sm:$0xff]  ;;  %v470_v6 = vld [vmem:[%s1208_s3 + $0x268] sm:$0xff] }
  0x28   :  { %484 = vmatpush.msrb.mxu1 %v401_v19  ;;  %515 = vmatpush.msra.mxu2 %v417_v20  ;;  %v1141_v9 = vld [vmem:[%s1207_s2] ss:$0 sm:$0xff]  ;;  %v468_v15 = vld [vmem:[%s1208_s3 + $0x258] sm:$0xff]  ;;  %v467_v21 = vld [vmem:[%s1208_s3 + $0x250] sm:$0xff]  ;;  %s779_s2 = smov 8  }
  0x29   :  { %693 = vmatmul.msk.f32.gmra.mxu1 %vm25_vm1, %v39_v38  ;;  %717 = vmatmul.msk.f32.vlgmr.msrb.gmra.mxu0 %vm25_vm1, %v273_v39  ;;  %v449_v38 = vld [vmem:[%s1208_s3 + $0x1c0] sm:$0xff] }
  0x2a   :  { %550 = vmatpush.msrb.mxu3 %v429_v22  ;;  %485 = vmatpush.msrb.mxu1 %v400_v23  ;;  %v469_v13 = vld [vmem:[%s1208_s3 + $0x260] sm:$0xff] }
  0x2b   :  { %711 = vmatmul.msk.f32.gmra.mxu3 %vm25_vm1, %v214_v41  ;;  %516 = vmatpush.msra.mxu2 %v416_v24  ;;  %v396_v41 = vld [vmem:[%s1208_s3 + $0x18] sm:$0xff] }
  0x2c   :  { %574 = vmatpush.msra.mxu0 %v452_v25  ;;  %551 = vmatpush.msrb.mxu3 %v428_v26 }
  0x2d   :  { %701 = vmatmul.msk.f32.gmra.mxu2 %vm25_vm1, %v151_v40  ;;  %486 = vmatpush.msrb.mxu1 %v399_v27  ;;  %v425_v40 = vld [vmem:[%s1208_s3 + $0x100] sm:$0xff]  ;;  %v466_v27 = vld [vmem:[%s1208_s3 + $0x248] sm:$0xff] }
  0x2e   :  { %517 = vmatpush.msra.mxu2 %v415_v28  ;;  %575 = vmatpush.msra.mxu0 %v451_v29 }
  0x2f   :  { %552 = vmatpush.msrb.mxu3 %v427_v30  ;;  %487 = vmatpush.msrb.mxu1 %v398_v31  ;;  %v465_v30 = vld [vmem:[%s1208_s3 + $0x240] sm:$0xff] }
  0x30   :  { %518 = vmatpush.msra.mxu2 %v414_v32  ;;  %576 = vmatpush.msra.mxu0 %v450_v33  ;;  %v464_v33 = vld [vmem:[%s1208_s3 + $0x238] sm:$0xff] }
  0x31   :  { %694 = vmatmul.msk.f32.gmra.mxu1 %vm25_vm1, %v40_v42  ;;  %718 = vmatmul.msk.f32.gmra.mxu0 %vm25_vm1, %v274_v43  ;;  %v412_v42 = vld [vmem:[%s1208_s3 + $0x98] sm:$0xff] }
  0x32   :  { %553 = vmatpush.msrb.mxu3 %v426_v34  ;;  %488 = vmatpush.msrb.mxu1 %v397_v36  ;;  %v448_v43 = vld [vmem:[%s1208_s3 + $0x1b8] sm:$0xff] }
  0x33   :  { %712 = vmatmul.msk.f32.gmra.mxu3 %vm25_vm1, %v215_v45  ;;  %519 = vmatpush.msra.mxu2 %v413_v37  ;;  %v411_v45 = vld [vmem:[%s1208_s3 + $0x90] sm:$0xff] }
  0x34   :  { %577 = vmatpush.msra.mxu0 %v449_v38  ;;  %554 = vmatpush.msrb.mxu3 %v425_v40  ;;  %v463_v37 = vld [vmem:[%s1208_s3 + $0x230] sm:$0xff] }
  0x35   :  { %702 = vmatmul.msk.f32.gmra.mxu2 %vm25_vm1, %v152_v44  ;;  %489 = vmatpush.msrb.mxu1 %v396_v41  ;;  %v395_v44 = vld [vmem:[%s1208_s3 + $0x10] sm:$0xff]  ;;  %v462_v41 = vld [vmem:[%s1208_s3 + $0x228] sm:$0xff] }
  0x36   :  { %520 = vmatpush.msra.mxu2 %v412_v42  ;;  %578 = vmatpush.msra.mxu0 %v448_v43 }
  0x37   :  { %490 = vmatpush.msrb.mxu1 %v395_v44  ;;  %728 = vmatpush.msra.mxu3 %v472_v2 }
  0x38   :  { %521 = vmatpush.msra.mxu2 %v411_v45 }
  0x39   :  { %719 = vmatmul.msk.f32.gmra.mxu0 %vm25_vm1, %v275_v46  ;;  %v447_v46 = vld [vmem:[%s1208_s3 + $0x1b0] sm:$0xff]  ;;  %729 = vmatpush.msra.mxu3 %v471_v3 }
  0x3a   :  { %579 = vmatpush.msra.mxu0 %v447_v46 }
  0x3b   :  { %730 = vmatpush.msra.mxu3 %v470_v6 }
  0x3c   :  { %580 = vmatpush.msra.mxu0 %v446_v50 }
  0x3d   :  { %703 = vmatmul.msk.f32.gmra.mxu2 %vm25_vm1, %v153_v47  ;;  %731 = vmatpush.msra.mxu3 %v469_v13 }
  0x3e   :  { %581 = vmatpush.msra.mxu0 %v445_v54 }
  0x3f   :  { %732 = vmatpush.msra.mxu3 %v468_v15 }
  0x40   :  { %582 = vmatpush.msra.mxu0 %v444_v57 }
  0x41   :  { %720 = vmatmul.msk.f32.gmra.mxu0 %vm25_vm1, %v276_v48  ;;  %v394_v48 = vld [vmem:[%s1208_s3 + $0x8] sm:$0xff]  ;;  %733 = vmatpush.msra.mxu3 %v467_v21 }
  0x42   :  { %491 = vmatpush.msrb.mxu1 %v394_v48  ;;  %583 = vmatpush.msra.mxu0 %v443_v58  ;;  %v461_v48 = vld [vmem:[%s1208_s3 + $0x220] sm:$0xff]  ;;  %v458_v58 = vld [vmem:[%s1208_s3 + $0x208] sm:$0xff] }
  0x43   :  { %734 = vmatpush.msra.mxu3 %v466_v27 }
  0x44   :  { %492 = vmatpush.msrb.mxu1 %v393_v52  ;;  %584 = vmatpush.msra.mxu0 %v442_v59  ;;  %v460_v52 = vld [vmem:[%s1208_s3 + $0x218] sm:$0xff] }
  0x45   :  { %735 = vmatpush.msra.mxu3 %v465_v30 }
  0x46   :  { %585 = vmatpush.msra.mxu0 %v441_v63  ;;  %601 = vmatpush.msra.mxu1 %v472_v2 }
  0x47   :  { %736 = vmatpush.msra.mxu3 %v464_v33 }
  0x48   :  { %602 = vmatpush.msra.mxu1 %v471_v3  ;;  %v457_v3 = vld [vmem:[%s1208_s3 + $0x200] sm:$0xff] }
  0x49   :  { %721 = vmatmul.msk.f32.gmra.mxu0 %vm25_vm1, %v277_v49  ;;  %v410_v49 = vld [vmem:[%s1208_s3 + $0x88] sm:$0xff]  ;;  %737 = vmatpush.msra.mxu3 %v463_v37 }
  0x4a   :  { %522 = vmatpush.msra.mxu2 %v410_v49  ;;  %603 = vmatpush.msra.mxu1 %v470_v6 }
  0x4b   :  { %738 = vmatpush.msra.mxu3 %v462_v41 }
  0x4c   :  { %523 = vmatpush.msra.mxu2 %v409_v53  ;;  %604 = vmatpush.msra.mxu1 %v469_v13  ;;  %v459_v53 = vld [vmem:[%s1208_s3 + $0x210] sm:$0xff] }
  0x4d   :  { %739 = vmatpush.msra.mxu3 %v461_v48 }
  0x4e   :  { %605 = vmatpush.msra.mxu1 %v468_v15 }
  0x4f   :  { %740 = vmatpush.msra.mxu3 %v460_v52 }
  0x50   :  { %606 = vmatpush.msra.mxu1 %v467_v21 }
  0x51   :  { %741 = vmatpush.msra.mxu3 %v459_v53 }
  0x52   :  { %607 = vmatpush.msra.mxu1 %v466_v27 }
  0x53   :  { %742 = vmatpush.msra.mxu3 %v458_v58 }
  0x54   :  { %608 = vmatpush.msra.mxu1 %v465_v30 }
  0x55   :  { %743 = vmatpush.msra.mxu3 %v457_v3 }
  0x56   :  { %609 = vmatpush.msra.mxu1 %v464_v33 }
  0x58   :  { %610 = vmatpush.msra.mxu1 %v463_v37 }
  0x5a   :  { %611 = vmatpush.msra.mxu1 %v462_v41 }
  0x5c   :  { %612 = vmatpush.msra.mxu1 %v461_v48  ;;  %v749_v48 = vld [vmem:[%s1209_s4] ss:$0 sm:$0xff]  ;;  %s777_s4 = smov [#allocation4]  }
  0x5d   :  { %s665_s1 = sshll.u32 %s777_s4, 4  ;;  %s666_s1 = int_to_ptr.vmem [resolvable:$true] %s665_s1 }
  0x5e   :  { %613 = vmatpush.msra.mxu1 %v460_v52 }
  0x60   :  { %614 = vmatpush.msra.mxu1 %v459_v53 }
  0x62   :  { %615 = vmatpush.msra.mxu1 %v458_v58 }
  0x64   :  { %616 = vmatpush.msra.mxu1 %v457_v3 }
  0x8e   :  { %v87_v35 = vpop.f32.mrf.mxu0  ;;  %v134_v47 = vpop.f32.mrf.mxu1 }
  0x8f   :  { %v135_v61 = vadd.f32 %v134_v47, %v87_v35 }
  0x90   :  { %v1074_v39 = vpop.f32.mrf.mxu2 }
  0x96   :  { %v90_v51 = vpop.f32.mrf.mxu0  ;;  %v253_v56 = vpop.f32.mrf.mxu3 }
  0x97   :  { %v137_v60 = vpop.f32.mrf.mxu1 }
  0x98   :  { %v1115_v55 = vpop.f32.mrf.mxu2  ;;  %v138_v11 = vadd.f32 %v137_v60, %v90_v51 }
  0x9e   :  { %v93_v62 = vpop.f32.mrf.mxu0  ;;  %v256_v5 = vpop.f32.mrf.mxu3 }
  0x9f   :  { %v140_v16 = vpop.f32.mrf.mxu1 }
  0xa0   :  { %v191_v0 = vpop.f32.mrf.mxu2  ;;  %v141_v28 = vadd.f32 %v140_v16, %v93_v62 }
  0xa1   :  { %v206_v1 = vadd.f32 %v191_v0, %v135_v61 }
  0xa3   :  { %v268_v8 = vadd.f32 %v253_v56, %v206_v1 }
  0xa6   :  { %v315_v12 = vpop.f32.mrf.mxu0  ;;  %v259_v25 = vpop.f32.mrf.mxu3 }
  0xa7   :  { %v330_v18 = vadd.f32 %v315_v12, %v268_v8  ;;  %v143_v35 = vpop.f32.mrf.mxu1 }
  0xa8   :  { %v194_v19 = vpop.f32.mrf.mxu2  ;;  %v144_v45 = vadd.f32 %v143_v35, %v1074_v39 }
  0xa9   :  { %v207_v20 = vadd.f32 %v194_v19, %v138_v11  ;;  %v339_v22 = vadd.f32 %v1141_v9, %v330_v18 }
  0xab   :  { %vm344_vm2 = vcmp.ge.f32.partialorder %v339_v22, 0.0  ;;  %v349_v23 = vmul.f32 0.2, %v339_v22  ;;  %v269_v24 = vadd.f32 %v256_v5, %v207_v20 }
  0xad   :  { %v354_v26 = vsel %vm344_vm2, %v339_v22, %v349_v23 }
  0xae   :  { %359 = vst [vmem:[#allocation3 + $0x8] sm:$0xff] %v354_v26  ;;  %v318_v29 = vpop.f32.mrf.mxu0  ;;  %555 = vmatmul.f32.vlgmr.msrb.gmra.mxu3 %v354_v26  ;;  %v262_v47 = vpop.f32.mrf.mxu3 }
  0xaf   :  { %v331_v31 = vadd.f32 %v318_v29, %v269_v24  ;;  %v146_v54 = vpop.f32.mrf.mxu1 }
  0xb0   :  { %v197_v32 = vpop.f32.mrf.mxu2  ;;  %v147_v63 = vadd.f32 %v146_v54, %v1115_v55 }
  0xb1   :  { %v208_v34 = vadd.f32 %v197_v32, %v141_v28  ;;  %v340_v36 = vadd.f32 %v1141_v9, %v331_v31 }
  0xb3   :  { %vm345_vm3 = vcmp.ge.f32.partialorder %v340_v36, 0.0  ;;  %v350_v38 = vmul.f32 0.2, %v340_v36  ;;  %v270_v40 = vadd.f32 %v259_v25, %v208_v34 }
  0xb5   :  { %v355_v42 = vsel %vm345_vm3, %v340_v36, %v350_v38  ;;  %v368_v43 = vld [vmem:[#allocation3 + $0x6] sm:$0xff] }
  0xb6   :  { %v373_v44 = vld [vmem:[#allocation3 + $0x7] sm:$0xff]  ;;  %360 = vst [vmem:[#allocation3 + $0x10] sm:$0xff] %v355_v42  ;;  %v321_v46 = vpop.f32.mrf.mxu0  ;;  %493 = vmatmul.f32.vlgmr.msrb.gmra.mxu1 %v368_v43  ;;  %558 = vmatmul.f32.gmra.mxu3 %v355_v42  ;;  %v265_v6 = vpop.f32.mrf.mxu3 }
  0xb7   :  { %524 = vmatmul.f32.vlgmr.msra.gmra.mxu2 %v373_v44  ;;  %v332_v49 = vadd.f32 %v321_v46, %v270_v40 }
  0xb8   :  { %v200_v50 = vpop.f32.mrf.mxu2 }
  0xb9   :  { %v209_v51 = vadd.f32 %v200_v50, %v144_v45  ;;  %v341_v39 = vadd.f32 %v1141_v9, %v332_v49 }
  0xbb   :  { %vm346_vm4 = vcmp.ge.f32.partialorder %v341_v39, 0.0  ;;  %v351_v56 = vmul.f32 0.2, %v341_v39  ;;  %v271_v57 = vadd.f32 %v262_v47, %v209_v51 }
  0xbd   :  { %v356_v59 = vsel %vm346_vm4, %v341_v39, %v351_v56  ;;  %v369_v60 = vld [vmem:[#allocation3 + $0xe] sm:$0xff] }
  0xbe   :  { %v374_v61 = vld [vmem:[#allocation3 + $0xf] sm:$0xff]  ;;  %361 = vst [vmem:[#allocation3 + $0x18] sm:$0xff] %v356_v59  ;;  %v324_v0 = vpop.f32.mrf.mxu0  ;;  %496 = vmatmul.f32.gmra.mxu1 %v369_v60 }
  0xbf   :  { %v383_v62 = vld [vmem:[#allocation3 + $0x9] sm:$0xff]  ;;  %527 = vmatmul.f32.gmra.mxu2 %v374_v61  ;;  %365 = vst [vmem:[#allocation3 + $0x18] sm:$0x3] %v776_v4  ;;  %v333_v1 = vadd.f32 %v324_v0, %v271_v57 }
  0xc0   :  { %586 = vmatmul.f32.vlgmr.msra.gmra.mxu0 %v383_v62  ;;  %v203_v2 = vpop.f32.mrf.mxu2  ;;  %366 = vst [vmem:[#allocation3 + $0x1e] sm:$0x3] %v776_v4 }
  0xc1   :  { %v210_v5 = vadd.f32 %v203_v2, %v147_v63  ;;  %v342_v55 = vadd.f32 %v1141_v9, %v333_v1 }
  0xc3   :  { %vm347_vm5 = vcmp.ge.f32.partialorder %v342_v55, 0.0  ;;  %v352_v8 = vmul.f32 0.2, %v342_v55  ;;  %v272_v11 = vadd.f32 %v265_v6, %v210_v5 }
  0xc5   :  { %v357_v12 = vsel %vm347_vm5, %v342_v55, %v352_v8 }
  0xc6   :  { %362 = vst [vmem:[#allocation3 + $0x20] sm:$0xff] %v357_v12  ;;  %v327_v13 = vpop.f32.mrf.mxu0  ;;  %v370_v15 = vld [vmem:[#allocation3 + $0x16] sm:$0xff] }
  0xc7   :  { %v384_v16 = vld [vmem:[#allocation3 + $0x11] sm:$0xff]  ;;  %v334_v18 = vadd.f32 %v327_v13, %v272_v11  ;;  %499 = vmatmul.f32.gmra.mxu1 %v370_v15 }
  0xc8   :  { %v375_v19 = vld [vmem:[#allocation3 + $0x17] sm:$0xff]  ;;  %589 = vmatmul.f32.gmra.mxu0 %v384_v16 }
  0xc9   :  { %v380_v4 = vld [vmem:[#allocation3 + $0x18] sm:$0xff]  ;;  %530 = vmatmul.f32.gmra.mxu2 %v375_v19  ;;  %v343_v20 = vadd.f32 %v1141_v9, %v334_v18  ;;  %v388_v9 = vld [vmem:[#allocation3 + $0xa] sm:$0xff] }
  0xca   :  { %561 = vmatmul.f32.gmra.mxu3 %v380_v4  ;;  %v389_v31 = vld [vmem:[#allocation3 + $0x12] sm:$0xff] }
  0xcb   :  { %vm348_vm6 = vcmp.ge.f32.partialorder %v343_v20, 0.0  ;;  %v353_v21 = vmul.f32 0.2, %v343_v20 }
  0xcd   :  { %v358_v22 = vsel %vm348_vm6, %v343_v20, %v353_v21  ;;  %v371_v23 = vld [vmem:[#allocation3 + $0x1e] sm:$0xff] }
  0xce   :  { %v376_v24 = vld [vmem:[#allocation3 + $0x1f] sm:$0xff]  ;;  %363 = vst [vmem:[#allocation3 + $0x28] sm:$0xff] %v358_v22 }
  0xcf   :  { %v385_v25 = vld [vmem:[#allocation3 + $0x19] sm:$0xff]  ;;  %501 = vmatmul.f32.gmra.mxu1 %v371_v23 }
  0xd0   :  { %592 = vmatmul.f32.gmra.mxu0 %v385_v25  ;;  %v390_v33 = vld [vmem:[#allocation3 + $0x1a] sm:$0xff] }
  0xd1   :  { %532 = vmatmul.f32.gmra.mxu2 %v376_v24 }
  0xd2   :  { %563 = vmatmul.f32.gmra.mxu3 %v357_v12 }
  0xd5   :  { %v372_v26 = vld [vmem:[#allocation3 + $0x26] sm:$0xff] }
  0xd6   :  { %v377_v27 = vld [vmem:[#allocation3 + $0x27] sm:$0xff] }
  0xd7   :  { %v386_v28 = vld [vmem:[#allocation3 + $0x21] sm:$0xff]  ;;  %504 = vmatmul.f32.gmra.mxu1 %v372_v26  ;;  %v387_v29 = vld [vmem:[#allocation3 + $0x29] sm:$0xff] }
  0xd8   :  { %594 = vmatmul.f32.gmra.mxu0 %v386_v28  ;;  %v391_v30 = vld [vmem:[#allocation3 + $0x22] sm:$0xff]  ;;  %v392_v32 = vld [vmem:[#allocation3 + $0x2a] sm:$0xff] }
  0xd9   :  { %535 = vmatmul.f32.gmra.mxu2 %v377_v27 }
  0xda   :  { %566 = vmatmul.f32.gmra.mxu3 %v358_v22 }
  0xdf   :  { %617 = vmatmul.f32.vlgmr.msra.gmra.mxu1 %v388_v9 }
  0xe0   :  { %597 = vmatmul.f32.gmra.mxu0 %v387_v29 }
  0xe2   :  { %625 = vmatmul.f32.vlgmr.msra.gmra.mxu3 %v391_v30 }
  0xe7   :  { %620 = vmatmul.f32.gmra.mxu1 %v389_v31 }
  0xea   :  { %628 = vmatmul.f32.gmra.mxu3 %v392_v32 }
  0xef   :  { %623 = vmatmul.f32.gmra.mxu1 %v390_v33 }
 0x131   :  { %v556_v36 = vpop.f32.mrf.mxu3 }
 0x133   :  { %v494_v34 = vpop.f32.mrf.mxu1 }
 0x134   :  { %v495_v49 = vadd.f32 %v749_v48, %v494_v34 }
 0x139   :  { %v559_v41 = vpop.f32.mrf.mxu3 }
 0x13a   :  { %v525_v35 = vpop.f32.mrf.mxu2 }
 0x13b   :  { %v497_v37 = vpop.f32.mrf.mxu1  ;;  %v526_v50 = vadd.f32 %v525_v35, %v495_v49 }
 0x13c   :  { %v498_v56 = vadd.f32 %v749_v48, %v497_v37 }
 0x13d   :  { %v587_v38 = vpop.f32.mrf.mxu0  ;;  %v557_v53 = vadd.f32 %v556_v36, %v526_v50 }
 0x13f   :  { %v588_v58 = vadd.f32 %v587_v38, %v557_v53 }
 0x142   :  { %v528_v40 = vpop.f32.mrf.mxu2 }
 0x143   :  { %v529_v59 = vadd.f32 %v528_v40, %v498_v56 }
 0x144   :  { %v500_v42 = vpop.f32.mrf.mxu1 }
 0x145   :  { %v590_v43 = vpop.f32.mrf.mxu0  ;;  %v560_v0 = vadd.f32 %v559_v41, %v529_v59 }
 0x147   :  { %v591_v12 = vadd.f32 %v590_v43, %v560_v0 }
 0x14c   :  { %v531_v44 = vpop.f32.mrf.mxu2  ;;  %v502_v46 = vpop.f32.mrf.mxu1 }
 0x14d   :  { %v562_v45 = vpop.f32.mrf.mxu3  ;;  %v593_v47 = vpop.f32.mrf.mxu0  ;;  %v503_v54 = vadd.f32 %v749_v48, %v502_v46 }
 0x154   :  { %v505_v52 = vpop.f32.mrf.mxu1  ;;  %v533_v39 = vpop.f32.mrf.mxu2 }
 0x155   :  { %v564_v51 = vpop.f32.mrf.mxu3  ;;  %v534_v57 = vadd.f32 %v533_v39, %v503_v54  ;;  %v595_v1 = vpop.f32.mrf.mxu0  ;;  %v506_v5 = vadd.f32 %v749_v48, %v505_v52 }
 0x157   :  { %v565_v63 = vadd.f32 %v564_v51, %v534_v57 }
 0x159   :  { %v596_v55 = vadd.f32 %v595_v1, %v565_v63 }
 0x15c   :  { %v618_v61 = vpop.f32.mrf.mxu1  ;;  %v536_v2 = vpop.f32.mrf.mxu2 }
 0x15d   :  { %v567_v60 = vpop.f32.mrf.mxu3  ;;  %v619_v62 = vadd.f32 %v618_v61, %v588_v58  ;;  %v537_v8 = vadd.f32 %v536_v2, %v506_v5  ;;  %v598_v23 = vpop.f32.mrf.mxu0 }
 0x15f   :  { %vm632_vm7 = vcmp.ge.f32.partialorder %v619_v62, 0.0  ;;  %v636_v3 = vmul.f32 0.2, %v619_v62  ;;  %v568_v4 = vadd.f32 %v567_v60, %v537_v8 }
 0x161   :  { %v640_v6 = vsel %vm632_vm7, %v619_v62, %v636_v3  ;;  %v599_v26 = vadd.f32 %v598_v23, %v568_v4 }
 0x162   :  { %v646_v11 = vmul.f32 0.1, %v640_v6 }
 0x164   :  { %v648_v15 = vadd.f32 %v646_v11, %v852_v10  ;;  %v621_v18 = vpop.f32.mrf.mxu1 }
 0x165   :  { %v626_v13 = vpop.f32.mrf.mxu3  ;;  %v622_v19 = vadd.f32 %v621_v18, %v591_v12 }
 0x166   :  { %v627_v16 = vadd.f32 %v626_v13, %v596_v55  ;;  %650 = vst.msk [vmem:[#allocation4] sm:$0xff] %vm25_vm1, %v648_v15 }
 0x167   :  { %vm633_vm9 = vcmp.ge.f32.partialorder %v622_v19, 0.0  ;;  %v637_v21 = vmul.f32 0.2, %v622_v19 }
 0x168   :  { %vm634_vm8 = vcmp.ge.f32.partialorder %v627_v16, 0.0  ;;  %v638_v20 = vmul.f32 0.2, %v627_v16 }
 0x169   :  { %v641_v25 = vsel %vm633_vm9, %v622_v19, %v637_v21 }
 0x16a   :  { %v642_v22 = vsel %vm634_vm8, %v627_v16, %v638_v20  ;;  %v647_v27 = vmul.f32 0.1, %v641_v25 }
 0x16b   :  { %v654_v24 = vmul.f32 0.1, %v642_v22 }
 0x16c   :  { %v649_v10 = vadd.f32 %v647_v27, %v879_v17  ;;  %v624_v30 = vpop.f32.mrf.mxu1 }
 0x16d   :  { %v656_v28 = vadd.f32 %v833_v7, %v654_v24  ;;  %v629_v29 = vpop.f32.mrf.mxu3 }
 0x16e   :  { %v630_v9 = vadd.f32 %v629_v29, %v599_v26  ;;  %651 = vst.msk [vmem:[#allocation4 + $0x8] sm:$0xff] %vm25_vm1, %v649_v10 }
 0x16f   :  { %659 = vst.msk [vmem:[#allocation4 + $0x10] sm:$0xff] %vm25_vm1, %v656_v28 }
 0x170   :  { %vm635_vm10 = vcmp.ge.f32.partialorder %v630_v9, 0.0  ;;  %v639_v31 = vmul.f32 0.2, %v630_v9 }
 0x172   :  { %v643_v32 = vsel %vm635_vm10, %v630_v9, %v639_v31 }
 0x173   :  { %v655_v33 = vmul.f32 0.1, %v643_v32 }
 0x175   :  { %v657_v7 = vadd.f32 %v867_v14, %v655_v33 }
 0x177   :  { %660 = vst.msk [vmem:[#allocation4 + $0x18] sm:$0xff] %vm25_vm1, %v657_v7 }
 0x178   :  { %673 = dma.vmem_to_hbm [thread:$0]  %s666_s1, 512, %s668_s17, [#allocation5], %s778_s18, %s778_s18, %s779_s2  }
 0x179   :  { %774 = dma.done.wait [#allocation5], 512  }
 0x17a   :  { %775 = vsyncadd [#allocation5], 4294966784 }
 0x17b   :  { %678 = vsyncpa [#allocation5], 1 }

</bundles_post_ra>
